<compile_context>
chip_gen: v7x
topology: tpu7x:2x2x1
jax: 0.10.0
libtpu: 0.0.40
codegen_flags: <defaults>
</compile_context>

<pallas_src>
from functools import partial

import jax
import jax.numpy as jnp
from jax.experimental import pallas as pl
from jax.experimental.pallas import tpu as pltpu

_LANES = 128
_MAX_TILE_ROWS = 512  # 512*128 elems/tile/channel -> ~0.5 MiB f32 lsm tile


def _round_up(x, m):
    return ((x + m - 1) // m) * m


def _focal_loss_kernel(gamma, n_pix, lsm_ref, tgt_ref, out_ref, acc_ref):
    """One (image, spatial-tile) grid step.

    lsm_ref : (2, TR, 128) VMEM -- log-softmax tiles of the two classes
    tgt_ref : (TR, 128)    VMEM -- binary target tile
    out_ref : (8, 128)     VMEM -- per-image loss (broadcast), written on last tile
    acc_ref : (3,)         SMEM -- [sum(tgt), pos-term sum, neg-term sum]
    """
    t = pl.program_id(1)

    @pl.when(t == 0)
    def _():
        acc_ref[0] = jnp.float32(0.0)
        acc_ref[1] = jnp.float32(0.0)
        acc_ref[2] = jnp.float32(0.0)

    lsm1 = lsm_ref[0].astype(jnp.float32)   # log p(class 0)
    lsm2 = lsm_ref[1].astype(jnp.float32)   # log p(class 1)
    tgt = tgt_ref[...].astype(jnp.float32)

    is_pos = tgt > 0.0
    # Binary targets: only one of the two exp()s is ever used per pixel, so
    # select the argument *before* the (EUP-bound) exp instead of computing both:
    #   tgt == 1:  lsm2 * exp(gamma * lsm1)   (== lsm2 * sm1)
    #   tgt == 0:  lsm1 * exp(gamma * lsm2)   (== lsm1 * sm2)
    exp_arg = jnp.where(is_pos, lsm1, lsm2)
    other_lsm = jnp.where(is_pos, lsm2, lsm1)
    term = other_lsm * jnp.exp(gamma * exp_arg)

    acc_ref[0] = acc_ref[0] + jnp.sum(tgt)
    acc_ref[1] = acc_ref[1] + jnp.sum(jnp.where(is_pos, term, 0.0))
    acc_ref[2] = acc_ref[2] + jnp.sum(jnp.where(is_pos, 0.0, term))

    @pl.when(t == pl.num_programs(1) - 1)
    def _():
        true_pix = acc_ref[0]
        pos_sum = acc_ref[1]
        neg_sum = acc_ref[2]
        p_weight = 10.0 * 2.0 * true_pix / n_pix
        n_weight = 2.0 * (n_pix - true_pix) / n_pix
        # Closed forms: sum(neg_target) = p_weight*(n_pix-true_pix),
        #               sum(target_w)  = n_weight*true_pix
        denom = p_weight * (n_pix - true_pix) + n_weight * true_pix
        num = p_weight * neg_sum + n_weight * pos_sum
        # TODO(synk): denom == 0 for all-zero / all-one target images; this
        # matches the PyTorch reference (which also yields inf/nan there).
        loss = -num / denom
        out_ref[...] = jnp.full(out_ref.shape, loss, dtype=out_ref.dtype)


def my_focal_loss(lsm_vector, targets, gamma):
    """Pallas TPU equivalent of MyFocalLoss(gamma).forward(lsm_vector, targets).

    Assumes binary {0, 1} targets (as in the PyTorch module's intended usage).
    """
    B, C, H, W = lsm_vector.shape
    assert C == 2, "MyFocalLoss assumes exactly 2 classes in the channel dim"
    assert targets.shape == (B, H, W)
    n_pix = float(H * W)
    hw = H * W

    # Lane-dense re-tiling of the flattened spatial axis.
    rows = (hw + _LANES - 1) // _LANES
    tile_rows = min(_MAX_TILE_ROWS, _round_up(rows, 8))
    rows_padded = _round_up(rows, tile_rows)
    hw_padded = rows_padded * _LANES
    n_tiles = rows_padded // tile_rows

    lsm_flat = lsm_vector.reshape(B, C, hw)
    tgt_flat = targets.reshape(B, hw)
    if hw_padded != hw:
        pad = hw_padded - hw  # zero padding contributes 0 to all accumulators
        lsm_flat = jnp.pad(lsm_flat, ((0, 0), (0, 0), (0, pad)))
        tgt_flat = jnp.pad(tgt_flat, ((0, 0), (0, pad)))
    lsm_tiled = lsm_flat.reshape(B, C, rows_padded, _LANES)
    tgt_tiled = tgt_flat.reshape(B, rows_padded, _LANES)

    kernel = partial(_focal_loss_kernel, float(gamma), n_pix)

    tile_bytes = (C * tile_rows * _LANES * jnp.dtype(lsm_tiled.dtype).itemsize
                  + tile_rows * _LANES * jnp.dtype(tgt_tiled.dtype).itemsize)
    vmem_limit = int(min(32 << 20, max(6 * tile_bytes + (4 << 20), 16 << 20)))

    out = pl.pallas_call(
        kernel,
        out_shape=jax.ShapeDtypeStruct((B, 8, _LANES), jnp.float32),
        grid_spec=pltpu.PrefetchScalarGridSpec(
            num_scalar_prefetch=0,
            grid=(B, n_tiles),
            in_specs=[
                pl.BlockSpec((pl.Squeezed(), C, tile_rows, _LANES),
                             lambda b, t: (b, 0, t, 0)),
                pl.BlockSpec((pl.Squeezed(), tile_rows, _LANES),
                             lambda b, t: (b, t, 0)),
            ],
            out_specs=pl.BlockSpec((pl.Squeezed(), 8, _LANES),
                                   lambda b, t: (b, 0, 0)),
            scratch_shapes=[pltpu.SMEM((3,), jnp.float32)],
        ),
        compiler_params=pltpu.CompilerParams(
            dimension_semantics=("parallel", "arbitrary"),
            vmem_limit_bytes=vmem_limit,
        ),
    )(lsm_tiled, tgt_tiled)

    # out[b] holds image b's loss broadcast across an (8, 128) block.
    return jnp.sum(out[:, 0, 0])


def _reference_focal_loss(lsm_vector, targets, gamma):
    """Pure-JAX port of the PyTorch forward, used only for verification."""
    sm_vector = jnp.exp(lsm_vector) ** gamma
    B = lsm_vector.shape[0]
    tot = 0.0
    for i in range(B):
        sm_v1, sm_v2 = sm_vector[i, 0], sm_vector[i, 1]
        lsm_v1, lsm_v2 = lsm_vector[i, 0], lsm_vector[i, 1]
        target = targets[i]
        n_pix = float(target.shape[0] * target.shape[1])
        true_pix = jnp.sum(target)
        p_weight = 10 * 2 * true_pix / n_pix
        n_weight = 2 * (n_pix - true_pix) / n_pix
        neg_target = (1 - target) * p_weight
        target_w = target * n_weight
        s = jnp.sum(neg_target) + jnp.sum(target_w)
        sum_mat = lsm_v1 * neg_target * sm_v2 + lsm_v2 * target_w * sm_v1
        tot = tot + (-jnp.sum(sum_mat) / s)
    return tot


if __name__ == "__main__":
    gamma = 2.0
    key = jax.random.PRNGKey(0)

    # Case 1: small NCHW input, H*W = 256 (padded up to one lane-dense tile).
    B, C, H, W = 2, 2, 16, 16
    k_logits, k_tgt, key = jax.random.split(key, 3)
    logits = jax.random.normal(k_logits, (B, C, H, W), dtype=jnp.float32)
    lsm_vector = jax.nn.log_softmax(logits, axis=1)           # [B, 2, H, W]
    targets = (jax.random.uniform(k_tgt, (B, H, W)) > 0.5).astype(jnp.float32)

    loss = jax.block_until_ready(my_focal_loss(lsm_vector, targets, gamma))
    ref = _reference_focal_loss(lsm_vector, targets, gamma)
    assert jnp.allclose(loss, ref, rtol=1e-4, atol=1e-4), (loss, ref)

    # Case 2: spatial size not a multiple of 128 (exercises zero padding path).
    B2, H2, W2 = 3, 20, 20
    k_logits2, k_tgt2, key = jax.random.split(key, 3)
    logits2 = jax.random.normal(k_logits2, (B2, C, H2, W2), dtype=jnp.float32)
    lsm2 = jax.nn.log_softmax(logits2, axis=1)
    tgt2 = (jax.random.uniform(k_tgt2, (B2, H2, W2)) > 0.5).astype(jnp.float32)

    loss2 = jax.block_until_ready(my_focal_loss(lsm2, tgt2, gamma))
    ref2 = _reference_focal_loss(lsm2, tgt2, gamma)
    assert jnp.allclose(loss2, ref2, rtol=1e-4, atol=1e-4), (loss2, ref2)

    print("KERNEL_OK")
</pallas_src>

<mosaic_0001>
module attributes {stable_mosaic.version = 11 : i64} {
  func.func @_focal_loss_kernel(%arg0: i32, %arg1: i32, %arg2: memref<1x2x8x128xf32, #tpu.memory_space<vmem>>, %arg3: memref<1x8x128xf32, #tpu.memory_space<vmem>>, %arg4: memref<1x8x128xf32, #tpu.memory_space<vmem>>, %arg5: memref<3xf32, #tpu.memory_space<smem>>) attributes {dimension_semantics = [#tpu.dimension_semantics<parallel>, #tpu.dimension_semantics<arbitrary>], iteration_bounds = array<i64: 2, 1>, scalar_prefetch = 0 : i64, scratch_operands = 1 : i64, tpu.core_type = #tpu.core_type<tc>, window_params = [{transform_indices = @transform_0, window_bounds = array<i64: 1, 2, 8, 128>}, {transform_indices = @transform_1, window_bounds = array<i64: 1, 8, 128>}, {transform_indices = @transform_2, window_bounds = array<i64: 1, 8, 128>}]} {
    %c0_i32 = arith.constant 0 : i32
    %0 = arith.cmpi eq, %arg1, %c0_i32 : i32
    %1 = arith.extui %0 : i1 to i32
    %c0_i32_0 = arith.constant 0 : i32
    %2 = arith.cmpi ne, %1, %c0_i32_0 : i32
    scf.if %2 {
      %cst_23 = arith.constant 0.000000e+00 : f32
      %c0_24 = arith.constant 0 : index
      %45 = memref.load %arg5[%c0_24] : memref<3xf32, #tpu.memory_space<smem>>
      memref.store %cst_23, %arg5[%c0_24] : memref<3xf32, #tpu.memory_space<smem>>
      %cst_25 = arith.constant 0.000000e+00 : f32
      %c1_26 = arith.constant 1 : index
      %46 = memref.load %arg5[%c1_26] : memref<3xf32, #tpu.memory_space<smem>>
      memref.store %cst_25, %arg5[%c1_26] : memref<3xf32, #tpu.memory_space<smem>>
      %cst_27 = arith.constant 0.000000e+00 : f32
      %c2_28 = arith.constant 2 : index
      %47 = memref.load %arg5[%c2_28] : memref<3xf32, #tpu.memory_space<smem>>
      memref.store %cst_27, %arg5[%c2_28] : memref<3xf32, #tpu.memory_space<smem>>
    } else {
    }
    %c0 = arith.constant 0 : index
    %c0_1 = arith.constant 0 : index
    %c0_2 = arith.constant 0 : index
    %c0_3 = arith.constant 0 : index
    %3 = vector.load %arg2[%c0, %c0_1, %c0_2, %c0_3] : memref<1x2x8x128xf32, #tpu.memory_space<vmem>>, vector<1x1x8x128xf32>
    %4 = vector.shape_cast %3 : vector<1x1x8x128xf32> to vector<8x128xf32>
    %c0_4 = arith.constant 0 : index
    %c1 = arith.constant 1 : index
    %c0_5 = arith.constant 0 : index
    %c0_6 = arith.constant 0 : index
    %5 = vector.load %arg2[%c0_4, %c1, %c0_5, %c0_6] : memref<1x2x8x128xf32, #tpu.memory_space<vmem>>, vector<1x1x8x128xf32>
    %6 = vector.shape_cast %5 : vector<1x1x8x128xf32> to vector<8x128xf32>
    %c0_7 = arith.constant 0 : index
    %c0_8 = arith.constant 0 : index
    %c0_9 = arith.constant 0 : index
    %7 = vector.load %arg3[%c0_7, %c0_8, %c0_9] : memref<1x8x128xf32, #tpu.memory_space<vmem>>, vector<1x8x128xf32>
    %8 = vector.shape_cast %7 : vector<1x8x128xf32> to vector<8x128xf32>
    %cst = arith.constant 0.000000e+00 : f32
    %9 = vector.broadcast %cst : f32 to vector<8x128xf32>
    %10 = arith.cmpf ogt, %8, %9 : vector<8x128xf32>
    %11 = arith.select %10, %4, %6 : vector<8x128xi1>, vector<8x128xf32>
    %12 = arith.select %10, %6, %4 : vector<8x128xi1>, vector<8x128xf32>
    %cst_10 = arith.constant 2.000000e+00 : f32
    %13 = vector.broadcast %cst_10 : f32 to vector<8x128xf32>
    %14 = arith.mulf %13, %11 : vector<8x128xf32>
    %15 = math.exp %14 : vector<8x128xf32>
    %16 = arith.mulf %12, %15 : vector<8x128xf32>
    %c0_11 = arith.constant 0 : index
    %17 = memref.load %arg5[%c0_11] : memref<3xf32, #tpu.memory_space<smem>>
    %18 = vector.shape_cast %8 : vector<8x128xf32> to vector<1x8x128xf32>
    %cst_12 = arith.constant dense<0.000000e+00> : vector<1xf32>
    %19 = vector.multi_reduction <add>, %18, %cst_12 [1, 2] : vector<1x8x128xf32> to vector<1xf32>
    %20 = vector.shape_cast %19 : vector<1xf32> to vector<1x1x1xf32>
    %21 = vector.extract %20[0, 0, 0] : f32 from vector<1x1x1xf32>
    %22 = arith.addf %17, %21 : f32
    %c0_13 = arith.constant 0 : index
    %23 = memref.load %arg5[%c0_13] : memref<3xf32, #tpu.memory_space<smem>>
    memref.store %22, %arg5[%c0_13] : memref<3xf32, #tpu.memory_space<smem>>
    %c1_14 = arith.constant 1 : index
    %24 = memref.load %arg5[%c1_14] : memref<3xf32, #tpu.memory_space<smem>>
    %cst_15 = arith.constant 0.000000e+00 : f32
    %25 = vector.broadcast %cst_15 : f32 to vector<8x128xf32>
    %26 = arith.select %10, %16, %25 : vector<8x128xi1>, vector<8x128xf32>
    %27 = vector.shape_cast %26 : vector<8x128xf32> to vector<1x8x128xf32>
    %cst_16 = arith.constant dense<0.000000e+00> : vector<1xf32>
    %28 = vector.multi_reduction <add>, %27, %cst_16 [1, 2] : vector<1x8x128xf32> to vector<1xf32>
    %29 = vector.shape_cast %28 : vector<1xf32> to vector<1x1x1xf32>
    %30 = vector.extract %29[0, 0, 0] : f32 from vector<1x1x1xf32>
    %31 = arith.addf %24, %30 : f32
    %c1_17 = arith.constant 1 : index
    %32 = memref.load %arg5[%c1_17] : memref<3xf32, #tpu.memory_space<smem>>
    memref.store %31, %arg5[%c1_17] : memref<3xf32, #tpu.memory_space<smem>>
    %c2 = arith.constant 2 : index
    %33 = memref.load %arg5[%c2] : memref<3xf32, #tpu.memory_space<smem>>
    %cst_18 = arith.constant 0.000000e+00 : f32
    %34 = vector.broadcast %cst_18 : f32 to vector<8x128xf32>
    %35 = arith.select %10, %34, %16 : vector<8x128xi1>, vector<8x128xf32>
    %36 = vector.shape_cast %35 : vector<8x128xf32> to vector<1x8x128xf32>
    %cst_19 = arith.constant dense<0.000000e+00> : vector<1xf32>
    %37 = vector.multi_reduction <add>, %36, %cst_19 [1, 2] : vector<1x8x128xf32> to vector<1xf32>
    %38 = vector.shape_cast %37 : vector<1xf32> to vector<1x1x1xf32>
    %39 = vector.extract %38[0, 0, 0] : f32 from vector<1x1x1xf32>
    %40 = arith.addf %33, %39 : f32
    %c2_20 = arith.constant 2 : index
    %41 = memref.load %arg5[%c2_20] : memref<3xf32, #tpu.memory_space<smem>>
    memref.store %40, %arg5[%c2_20] : memref<3xf32, #tpu.memory_space<smem>>
    %c0_i32_21 = arith.constant 0 : i32
    %42 = arith.cmpi eq, %arg1, %c0_i32_21 : i32
    %43 = arith.extui %42 : i1 to i32
    %c0_i32_22 = arith.constant 0 : i32
    %44 = arith.cmpi ne, %43, %c0_i32_22 : i32
    scf.if %44 {
      %c0_23 = arith.constant 0 : index
      %45 = memref.load %arg5[%c0_23] : memref<3xf32, #tpu.memory_space<smem>>
      %c1_24 = arith.constant 1 : index
      %46 = memref.load %arg5[%c1_24] : memref<3xf32, #tpu.memory_space<smem>>
      %c2_25 = arith.constant 2 : index
      %47 = memref.load %arg5[%c2_25] : memref<3xf32, #tpu.memory_space<smem>>
      %cst_26 = arith.constant 2.000000e+01 : f32
      %48 = arith.mulf %cst_26, %45 : f32
      %cst_27 = arith.constant 2.560000e+02 : f32
      %49 = arith.divf %48, %cst_27 : f32
      %cst_28 = arith.constant 2.560000e+02 : f32
      %50 = arith.subf %cst_28, %45 : f32
      %cst_29 = arith.constant 2.000000e+00 : f32
      %51 = arith.mulf %cst_29, %50 : f32
      %cst_30 = arith.constant 2.560000e+02 : f32
      %52 = arith.divf %51, %cst_30 : f32
      %cst_31 = arith.constant 2.560000e+02 : f32
      %53 = arith.subf %cst_31, %45 : f32
      %54 = arith.mulf %49, %53 : f32
      %55 = arith.mulf %52, %45 : f32
      %56 = arith.addf %54, %55 : f32
      %57 = arith.mulf %49, %47 : f32
      %58 = arith.mulf %52, %46 : f32
      %59 = arith.addf %57, %58 : f32
      %cst_32 = arith.constant 0.000000e+00 : f32
      %60 = arith.subf %cst_32, %59 : f32
      %61 = arith.divf %60, %56 : f32
      %62 = vector.broadcast %61 : f32 to vector<8x128xf32>
      %c0_33 = arith.constant 0 : index
      %c0_34 = arith.constant 0 : index
      %c0_35 = arith.constant 0 : index
      %63 = vector.load %arg4[%c0_33, %c0_34, %c0_35] : memref<1x8x128xf32, #tpu.memory_space<vmem>>, vector<1x8x128xf32>
      %64 = vector.shape_cast %63 : vector<1x8x128xf32> to vector<8x128xf32>
      %65 = vector.shape_cast %62 : vector<8x128xf32> to vector<1x8x128xf32>
      tpu.vector_store %arg4[%c0_33, %c0_34, %c0_35], %65 {strides = array<i32>} : memref<1x8x128xf32, #tpu.memory_space<vmem>>, vector<1x8x128xf32>,
    } else {
    }
    return
  }
  func.func @transform_0(%arg0: i32, %arg1: i32) -> (i32, i32, i32, i32) {
    %c0_i32 = arith.constant 0 : i32
    %c0_i32_0 = arith.constant 0 : i32
    %c0_i32_1 = arith.constant 0 : i32
    return %arg0, %c0_i32, %arg1, %c0_i32_0 : i32, i32, i32, i32
  }
  func.func @transform_1(%arg0: i32, %arg1: i32) -> (i32, i32, i32) {
    %c0_i32 = arith.constant 0 : i32
    %c0_i32_0 = arith.constant 0 : i32
    return %arg0, %arg1, %c0_i32 : i32, i32, i32
  }
  func.func @transform_2(%arg0: i32, %arg1: i32) -> (i32, i32, i32) {
    %c0_i32 = arith.constant 0 : i32
    %c0_i32_0 = arith.constant 0 : i32
    %c0_i32_1 = arith.constant 0 : i32
    return %arg0, %c0_i32, %c0_i32_0 : i32, i32, i32
  }
}

</mosaic_0001>

<bundles_post_ra>
// kernel: tpu_custom_call.1
= control target key start
LH: loop header
LB: loop body
LE: loop exit
PB: predicated region body
PF: predicated region fallthrough
CT: control target
= control target key end

     0   :  { %s916_s0 = inlined_call_operand.hbm [shape: f32[2,2,8,128], index: 0, kind: input, shape index: {}]   ;;  %s917_s1 = inlined_call_operand.hbm [shape: f32[2,8,128], index: 1, kind: input, shape index: {}]   ;;  %s918_s2 = inlined_call_operand.hbm [shape: f32[2,8,128], index: 2, kind: output, shape index: {}]  }
   0x1   :  { %921 = sst [smem:[#allocation12_spill]] %s916_s0 }
   0x2   :  { %7 = vsyncpa [#allocation4], 0 }
   0x3   :  { %9 = vsyncpa [#allocation4 + $0x1], 0 }
   0x4   :  { %10 = vsyncpa [#allocation7], 0 }
   0x5   :  { %12 = vsyncpa [#allocation7 + $0x1], 0 }
   0x6   :  { %13 = vsyncpa [#allocation5], 0 }
   0x7   :  { %15 = vsyncpa [#allocation5 + $0x1], 0  ;;  %s697_s9 = smov 0   ;;  %s699_s10 = smov 0  }
   0x8   :  { %s701_s11 = smov 0   ;;  %s703_s12 = smov 0  }
   0x9   :  { %s705_s13 = smov 0   ;;  %s707_s14 = smov 0  }
   0xa LB: > { %s425_s15 = sadd.s32 4294967295, %s675_s14   ;;  %s426_s16 = sadd.s32 4294967294, %s675_s14   ;;  %s675_s14 = sphi %s707_s14, %s21_s14   ;;  %s671_s13 = sphi %s705_s13, %s939_s13   ;;  %s667_s12 = sphi %s703_s12, %s938_s12   ;;  %s663_s11 = sphi %s701_s11, %s937_s11   ;;  %s659_s10 = sphi %s699_s10, %s936_s10   ;;  %s655_s9 = sphi %s697_s9, %s935_s9  }
   0xb   : > { %s33_s17 = sadd.s32 1, %s671_s13  ;;  %s42_s18 = sadd.s32 1, %s663_s11 }
   0xc   : > { %p35_p0 = scmp.ge.s32.totalorder %s33_s17, 2  ;;  %p49_p1 = scmp.ne.s32.totalorder %s663_s11, %s659_s10 }
   0xd   : > { %p50_p2 = scmp.eq.s32.totalorder %s675_s14, 0  ;;  %p55_p3 = scmp.ne.s32.totalorder %s659_s10, %s655_s9 }
   0xe   : > { %s941_s17 = smov (%p35_p0, %s33_s17), 0  ;;  %p56_p5 = scmp.eq.s32.totalorder %s425_s15, 0 }
   0xf   : > { %p738_p4 = por %p50_p2, %p49_p1  ;;  %s37_s20 = ssub.s32 %s671_s13, %s941_s17 }
  0x10   : > { %p107_p6 = scmp.eq.s32.totalorder %s425_s15, 1  ;;  %p40_p7 = scmp.eq.s32.totalorder %s37_s20, 0 }
  0x11   : > { %p744_p8 = por %p56_p5, %p55_p3  ;;  %p113_p10 = scmp.eq.s32.totalorder %s426_s16, 1 }
  0x12   : > { %p748_p9 = por %p107_p6, %p49_p1  ;;  %p473_p13 = scmp.lt.s32.totalorder %s675_s14, 2 }
  0x13   : > { %s923_s21 = scalar_select %p744_p8, 1, 0 }
  0x14   : > { %s924_s22 = scalar_select %p748_p9, 1, 0 }
  0x15   : > { %s753_s23 = scalar_select %p40_p7, %s663_s11, %s42_s18  }
  0x16   : > { %p755_p11 = por %p113_p10, %p55_p3  ;;  %s762_s25 = sand.u32 1, %s663_s11  }
  0x17   : > { %s429_s26 = sshll.u32 %s762_s25, 4  ;;  %s447_s27 = sshll.u32 %s671_s13, 8 }
  0x18   : > { %s925_s24 = scalar_select %p755_p11, 1, 0 }
  0x19   : > { %s926_s0 = sld [smem:[#allocation12_spill]]  ;;  %s137_s3 = scalar_lea.vmem [#allocation3], %s429_s26 }
  0x1a   : > { %s145_s4 = sshll.u32 %s137_s3, 4  ;;  %p775_p0 = pnand %p473_p13, %p738_p4  ;;  %s771_s4 = int_to_ptr.vmem [resolvable:$true] %s145_s4 }
  0x1b   : > { %s134_s6 = scalar_lea.sflag [#allocation4], %s762_s25 }
  0x1c   : > { %p531_p3 = pneg %p775_p0 }
  0x1f   : > { %s769_s30 = scalar_lea.hbm %s926_s0, %s447_s27  ;;  %s534_s16 = scalar_lea.hbm %s926_s0, 512 }
  0x20   : > { %s529_s7 = scalar_lea.hbm %s769_s30, 256  ;;  %p535_p4 = scmp.lt.u32.totalorder %s769_s30, %s926_s0 }
  0x21   : > { %p530_p2 = scmp.ne.s32.totalorder %s769_s30, %s529_s7  ;;  %p536_p7 = scmp.lt.u32.totalorder %s534_s16, %s529_s7 }
  0x22   : > { %p538_p13 = scmp.lt.u32.totalorder %s529_s7, %s769_s30 }
  0x23   : > { %p532_p5 = pnand %p531_p3, %p530_p2  ;;  %p537_p10 = por %p536_p7, %p535_p4 }
  0x25   : > { %p533_p6 = pneg %p532_p5  ;;  %p539_p12 = por %p538_p13, %p537_p10 }
  0x27   : > { %p540_p1 = pnand %p539_p12, %p533_p6 }
  0x29   : > { %543 = shalt.err (!%p540_p1)
}
  0x2a   : > { %s544_s20 = scalar_lea.vmem %s771_s4, 256  ;;  %s677_s26 = smov [#allocation3]  }
  0x2b   : > { %p545_p2 = scmp.ne.s32.totalorder %s771_s4, %s544_s20  ;;  %s549_s27 = sshll.u32 %s677_s26, 4  ;;  %s550_s27 = int_to_ptr.vmem [resolvable:$false] %s549_s27 }
  0x2c   : > { %s551_s28 = scalar_lea.vmem %s550_s27, 512  ;;  %p552_p9 = scmp.lt.s32.totalorder %s771_s4, %s550_s27 }
  0x2d   : > { %p547_p5 = pnand %p545_p2, %p531_p3  ;;  %p553_p4 = scmp.lt.s32.totalorder %s551_s28, %s544_s20 }
  0x2f   : > { %p548_p11 = pneg %p547_p5  ;;  %p554_p7 = por %p553_p4, %p552_p9 }
  0x31   : > { %p555_p10 = pnand %p554_p7, %p548_p11 }
  0x33   : > { %558 = shalt.err (!%p555_p10)
}
  0x34   : > { %s678_s29 = smov 128   ;;  %s679_s3 = smov 8  }
  0x35   : > { %465 = dma.hbm_to_vmem [thread:$0]  (!%p775_p0), %s769_s30, 256, %s771_s4, %s134_s6, %s678_s29, %s678_s29, %s679_s3  }
  0x36   : > { %p172_p12 = scmp.lt.s32.totalorder %s675_s14, 3  ;;  %s432_s7 = sshll.u32 %s762_s25, 3 }
  0x37   : > { %s433_s8 = sshll.u32 %s671_s13, 7  ;;  %p928_p9 = scmp.ge.s32.totalorder %s675_s14, 1 }
  0x38   : > { %s820_s19 = scalar_lea.hbm %s917_s1, %s433_s8  ;;  %s159_s20 = scalar_lea.vmem [#allocation6], %s432_s7 }
  0x39   : > { %p813_p11 = pnand %p928_p9, %p172_p12  ;;  %s167_s26 = sshll.u32 %s159_s20, 4  ;;  %s168_s26 = int_to_ptr.vmem [resolvable:$true] %s167_s26 }
  0x3a   : > { %s156_s30 = scalar_lea.sflag [#allocation7], %s762_s25  ;;  %s559_s4 = scalar_lea.hbm %s820_s19, 128 }
  0x3b   : > { %s929_s15 = scalar_select %p813_p11, 1, 0 }
  0x3c   : > { %p560_p1 = scmp.ne.s32.totalorder %s820_s19, %s559_s4  ;;  %s564_s28 = scalar_lea.hbm %s917_s1, 256 }
  0x3d   : > { %p565_p2 = scmp.lt.u32.totalorder %s820_s19, %s917_s1  ;;  %p566_p5 = scmp.lt.u32.totalorder %s564_s28, %s559_s4 }
  0x3e   : > { %p562_p6 = pnand %p560_p1, %p531_p3  ;;  %p568_p7 = scmp.lt.u32.totalorder %s559_s4, %s820_s19 }
  0x3f   : > { %p567_p4 = por %p566_p5, %p565_p2 }
  0x40   : > { %p563_p13 = pneg %p562_p6 }
  0x41   : > { %p569_p10 = por %p568_p7, %p567_p4 }
  0x43   : > { %p570_p12 = pnand %p569_p10, %p563_p13 }
  0x45   : > { %573 = shalt.err (!%p570_p12)
}
  0x46   : > { %s574_s25 = scalar_lea.vmem %s168_s26, 128  ;;  %s680_s7 = smov [#allocation6]  }
  0x47   : > { %p575_p9 = scmp.ne.s32.totalorder %s168_s26, %s574_s25  ;;  %s579_s8 = sshll.u32 %s680_s7, 4  ;;  %s580_s8 = int_to_ptr.vmem [resolvable:$false] %s579_s8 }
  0x48   : > { %s581_s16 = scalar_lea.vmem %s580_s8, 256  ;;  %p582_p8 = scmp.lt.s32.totalorder %s168_s26, %s580_s8 }
  0x49   : > { %p577_p1 = pnand %p575_p9, %p531_p3  ;;  %p583_p11 = scmp.lt.s32.totalorder %s581_s16, %s574_s25 }
  0x4b   : > { %p578_p6 = pneg %p577_p1  ;;  %p584_p2 = por %p583_p11, %p582_p8 }
  0x4d   : > { %p585_p5 = pnand %p584_p2, %p578_p6 }
  0x4f   : > { %588 = shalt.err (!%p585_p5)
}
  0x50   : > { %468 = dma.hbm_to_vmem [thread:$0]  (!%p775_p0), %s820_s19, 128, %s168_s26, %s156_s30  }
  0x51   : > { %p930_p13 = scmp.ne.s32.totalorder %s929_s15, 0 }
  0x52   : > { %s845_s18 = sand.u32 (!%p930_p13), 1, %s659_s10   ;;  %p931_p3 = scmp.ne.s32.totalorder (!%p930_p13), %s923_s21, 0 }
  0x53   : > { %176 = sbr.rel (%p930_p13) target bundleno = 388 (0x184), region = 28  ;;  %s435_s20 = sshll.u32 (!%p930_p13), %s845_s18, 4 }
  0x54   : > { %s179_s4 = scalar_lea.sflag (!%p930_p13), [#allocation4], %s845_s18  ;;  %s182_s6 = scalar_lea.vmem (!%p930_p13), [#allocation3], %s435_s20 }
  0x5a   : > { %642 = dma.done.wait (%p931_p3), %s179_s4, 256  }
  0x5b   : > { %644 = vsyncadd (%p931_p3), %s179_s4, 4294967040  ;;  %s436_s5 = sshll.u32 %s845_s18, 3  ;;  %s188_s15 = scalar_lea.sflag [#allocation7], %s845_s18 }
  0x5c   : > { %s191_s19 = scalar_lea.vmem [#allocation6], %s436_s5 }
  0x5d   : > { %646 = dma.done.wait (%p931_p3), %s188_s15, 128  }
  0x5e   : > { %648 = vsyncadd (%p931_p3), %s188_s15, 4294967168  ;;  %v230_v0 = vld [vmem:[%s191_s19] sm:$0xff]  ;;  %v438_v2 = vld [vmem:[%s182_s6 + $0x8] sm:$0xff]  ;;  %s444_s15 = sshll.u32 %s667_s12, 7  ;;  %p932_p0 = scmp.ne.s32.totalorder %s924_s22, 0 }
  0x5f   : > { %v227_v1 = vld [vmem:[%s182_s6] sm:$0xff]  ;;  %239 = vadd.xlane.f32.xlu0 %v230_v0  ;;  %vm231_vm0 = vcmp.gt.f32.partialorder %v230_v0, 0.0 }
  0x60   : > { %v232_v3 = vsel %vm231_vm0, %v227_v1, %v438_v2  ;;  %v233_v6 = vsel %vm231_vm0, %v438_v2, %v227_v1 }
  0x61   : > { %v234_v4 = vmul.f32 2.0, %v232_v3 }
  0x63   : > { %v235_v5 = vmul.f32 1.442695, %v234_v4 }
  0x65   : > { %525 = vpow2.f32 %v235_v5 }
  0x6f   : > { %v526_v7 = vpop.eup %525 }
  0x70   : > { %v237_v8 = vmul.f32 %v526_v7, %v233_v6 }
  0x72   : > { %v266_v9 = vsel %vm231_vm0, 0.0, %v237_v8  ;;  %v252_v10 = vsel %vm231_vm0, %v237_v8, 0.0 }
  0x73   : > { %267 = vadd.xlane.f32.xlu1 %v266_v9  ;;  %253 = vadd.xlane.f32.xlu0 %v252_v10 }
  0xec   : > { %v240_v11 = vpop.xlane.xlu0 %239 }
  0xed   : > { %v241_v12 = vrot.slane %v240_v11, 4 }
  0xef   : > { %v242_v13 = vadd.f32 %v241_v12, %v240_v11 }
  0xf1   : > { %v243_v14 = vrot.slane %v242_v13, 2 }
  0xf3   : > { %v244_v15 = vadd.f32 %v243_v14, %v242_v13 }
  0xf5   : > { %v245_v16 = vrot.slane %v244_v15, 1 }
  0xf7   : > { %v246_v17 = vadd.f32 %v245_v16, %v244_v15 }
  0xf9   : > { %448 = vpush %v246_v17 }
 0x100   : > { %v268_v18 = vpop.xlane.xlu1 %267  ;;  %v254_v19 = vpop.xlane.xlu0 %253 }
 0x101   : > { %v269_v20 = vrot.slane %v268_v18, 4  ;;  %v255_v21 = vrot.slane %v254_v19, 4 }
 0x103   : > { %v270_v22 = vadd.f32 %v269_v20, %v268_v18  ;;  %v256_v23 = vadd.f32 %v255_v21, %v254_v19 }
 0x105   : > { %v271_v24 = vrot.slane %v270_v22, 2  ;;  %v257_v25 = vrot.slane %v256_v23, 2 }
 0x107   : > { %v272_v26 = vadd.f32 %v271_v24, %v270_v22  ;;  %v258_v27 = vadd.f32 %v257_v25, %v256_v23 }
 0x109   : > { %v259_v28 = vrot.slane %v258_v27, 1  ;;  %v273_v29 = vrot.slane %v272_v26, 1 }
 0x10b   : > { %v260_v30 = vadd.f32 %v259_v28, %v258_v27  ;;  %v274_v31 = vadd.f32 %v273_v29, %v272_v26 }
 0x10d   : > { %450 = vpush %v260_v30 }
 0x10e   : > { %452 = vpush %v274_v31 }
 0x12a   : > { %s449_s21 = spop %448 }
 0x12b   : > { %s289_s26 = ssub.f32 256.0, %s449_s21  ;;  %s285_s30 = smul.f32 20.0, %s449_s21 }
 0x12d   : > { %s290_s27 = smul.f32 2.0, %s289_s26 }
 0x12e   : > { %s288_s28 = smul.f32 0.00390625, %s285_s30  ;;  %s216_s30 = scalar_lea.vmem [#allocation8], %s436_s5 }
 0x12f   : > { %s293_s29 = smul.f32 0.00390625, %s290_s27  ;;  %s321_s0 = sshll.u32 %s216_s30, 4  ;;  %s869_s0 = int_to_ptr.vmem [resolvable:$true] %s321_s0 }
 0x130   : > { %s294_s3 = smul.f32 %s289_s26, %s288_s28  ;;  %s589_s12 = scalar_lea.vmem %s869_s0, 128 }
 0x131   : > { %s295_s25 = smul.f32 %s449_s21, %s293_s29  ;;  %p590_p8 = scmp.ne.s32.totalorder %s869_s0, %s589_s12 }
 0x132   : > { %s681_s5 = smov [#allocation8]  }
 0x133   : > { %s296_s7 = sadd.f32 %s295_s25, %s294_s3  ;;  %s867_s25 = scalar_lea.hbm %s918_s2, %s444_s15 }
 0x134   : > { %p591_p11 = pnand %p590_p8, %p932_p0 }
 0x135   : > { %v301_v32 = vstv %s296_s7 }
 0x136   : > { %527 = vrcp.f32 %v301_v32  ;;  %p592_p4 = pneg %p591_p11 }
 0x13e   : > { %s451_s8 = spop %450 }
 0x13f   : > { %s453_s16 = spop %452  ;;  %s298_s20 = smul.f32 %s451_s8, %s293_s29 }
 0x140   : > { %v528_v33 = vpop.eup %527  ;;  %s297_s4 = smul.f32 %s453_s16, %s288_s28  ;;  %s308_s28 = scalar_lea.sflag [#allocation5], %s845_s18 }
 0x141   : > { %454 = vpush %v528_v33  ;;  %s593_s29 = sshll.u32 %s681_s5, 4  ;;  %s594_s29 = int_to_ptr.vmem [resolvable:$false] %s593_s29 }
 0x142   : > { %s299_s6 = sadd.f32 %s298_s20, %s297_s4  ;;  %s595_s7 = scalar_lea.vmem %s594_s29, 256 }
 0x143   : > { %p596_p7 = scmp.lt.s32.totalorder %s869_s0, %s594_s29  ;;  %p597_p10 = scmp.lt.s32.totalorder %s595_s7, %s589_s12 }
 0x144   : > { %s300_s19 = ssub.f32 0.0, %s299_s6 }
 0x145   : > { %p598_p12 = por %p597_p10, %p596_p7 }
 0x147   : > { %p599_p9 = pnand %p598_p12, %p592_p4 }
 0x172   : > { %s455_s27 = spop %454 }
 0x173   : > { %s304_s26 = smul.f32 %s455_s27, %s300_s19 }
 0x175   : > { %v305_v34 = vstv %s304_s26 }
 0x176   : > { %306 = vst [vmem:[%s216_s30] sm:$0xff] %v305_v34 }
 0x177   : > { %602 = shalt.err (!%p599_p9)
}
 0x178   : > { %s603_s18 = scalar_lea.hbm %s867_s25, 128  ;;  %s607_s20 = scalar_lea.hbm %s918_s2, 256 }
 0x179   : > { %p604_p1 = scmp.ne.s32.totalorder %s867_s25, %s603_s18  ;;  %p608_p5 = scmp.lt.u32.totalorder %s867_s25, %s918_s2 }
 0x17a   : > { %p609_p13 = scmp.lt.u32.totalorder %s607_s20, %s603_s18  ;;  %p611_p8 = scmp.lt.u32.totalorder %s603_s18, %s867_s25 }
 0x17b   : > { %p605_p6 = pnand %p604_p1, %p932_p0 }
 0x17c   : > { %p610_p3 = por %p609_p13, %p608_p5 }
 0x17d   : > { %p606_p2 = pneg %p605_p6 }
 0x17e   : > { %p612_p11 = por %p611_p8, %p610_p3 }
 0x180   : > { %p613_p4 = pnand %p612_p11, %p606_p2 }
 0x182   : > { %616 = shalt.err (!%p613_p4)
}
 0x183   : > { %460 = dma.vmem_to_hbm [thread:$0]  (%p932_p0), %s869_s0, 128, %s867_s25, %s308_s28  }
 0x184 PF: > { %s333_s15 = sand.u32 1, %s655_s9   ;;  %p933_p7 = scmp.ne.s32.totalorder %s925_s24, 0 }
 0x185   : > { %p934_p10 = scmp.ge.s32.totalorder %s675_s14, 2  ;;  %s334_s19 = scalar_lea.sflag [#allocation5], %s333_s15 }
 0x187   : > { %p470_p12 = pnand %p934_p10, %p933_p7 }
 0x189   : > { %650 = dma.done.wait (!%p470_p12), %s334_s19, 128  }
 0x18a   : > { %652 = vsyncadd (!%p470_p12), %s334_s19, 4294967168  ;;  %s21_s14 = sadd.s32 1, %s675_s14   ;;  %s935_s9 = smov %s659_s10 }
 0x18b   : > { %p18_p9 = scmp.ge.s32.totalorder %s21_s14, 4   ;;  %s936_s10 = smov %s663_s11 }
 0x18c   : > { %s937_s11 = smov %s753_s23  ;;  %s938_s12 = smov %s671_s13 }
 0x18d   : > { %s939_s13 = smov %s941_s17  ;;  %20 = sbr.rel (!%p18_p9) target bundleno = 10 (0xa), region = 101 }
 0x194   :  { %339 = vsyncpa [#allocation4], 1 }
 0x195   :  { %341 = vsyncpa [#allocation4 + $0x1], 1 }
 0x196   :  { %342 = vsyncpa [#allocation7], 1 }
 0x197   :  { %344 = vsyncpa [#allocation7 + $0x1], 1 }
 0x198   :  { %345 = vsyncpa [#allocation5], 1 }
 0x199   :  { %347 = vsyncpa [#allocation5 + $0x1], 1 }

</bundles_post_ra>
